<compile_context>
chip_gen: v7x
topology: tpu7x:2x2x1
jax: 0.10.0
libtpu: 0.0.40
codegen_flags: <defaults>
</compile_context>

<pallas_src>
import functools

import jax
import jax.numpy as jnp
from jax.experimental import pallas as pl
from jax.experimental.pallas import tpu as pltpu

BN_EPS = 1e-5
VMEM_LIMIT = 32 * 1024 * 1024  # safe on v5e/v6e (128 MiB) and v7x (64 MiB phys)


def _pick_tile(hw: int) -> int:
    """Largest lane tile (multiple of 128 when possible) that divides H*W."""
    for t in (1024, 512, 384, 256, 128):
        if hw % t == 0:
            return t
    return hw  # small / odd spatial sizes: full row (equal-to-full-dim is legal)


def _stats_kernel(x_ref, w_ref, s_ref, q_ref):
    """Accumulate per-channel sum and sum-of-squares of z = W @ x.

    x_ref: (1, C_in, TILE)  activation tile (NCHW viewed as (N, C_in, H*W))
    w_ref: (C_out, C_in)    1x1-conv weight
    s_ref: (C_out, 1)       resident accumulator: sum(z)
    q_ref: (C_out, 1)       resident accumulator: sum(z^2), via tile-centered partials
    """
    @pl.when((pl.program_id(0) == 0) & (pl.program_id(1) == 0))
    def _():
        s_ref[...] = jnp.zeros_like(s_ref)
        q_ref[...] = jnp.zeros_like(q_ref)

    x = x_ref[0]                                                      # (C_in, TILE)
    z = jnp.dot(w_ref[...], x, preferred_element_type=jnp.float32)    # (C_out, TILE)

    n = jnp.float32(z.shape[1])
    s_t = jnp.sum(z, axis=1, keepdims=True)                           # (C_out, 1)
    mu_t = s_t / n
    zc = z - mu_t                                                     # tile-centered
    m2_t = jnp.sum(zc * zc, axis=1, keepdims=True)                    # (C_out, 1)

    s_ref[...] += s_t
    q_ref[...] += m2_t + n * mu_t * mu_t


def _apply_kernel(x_ref, w_ref, b_ref, o_ref, *, apply_relu: bool):
    """out = [relu]( (scale*W) @ x + shift )  -- conv + BN + ReLU fully folded."""
    x = x_ref[0]                                                      # (C_in, TILE)
    y = jnp.dot(w_ref[...], x, preferred_element_type=jnp.float32)    # (C_out, TILE)
    y = y + b_ref[...]                                                # (C_out,1) bcast
    if apply_relu:
        y = jnp.maximum(y, 0.0)
    o_ref[0] = y.astype(o_ref.dtype)


def regressor_forward(x_nchw, conv_w, conv_b, bn_gamma, bn_beta, is_relu=True):
    """x_nchw: (N, C_in, H, W). conv_w: (C_out, C_in, 1, 1). Returns (N, C_out, H, W)."""
    N, C_in, H, W = x_nchw.shape
    C_out = conv_w.shape[0]
    HW = H * W
    M = N * HW
    TILE = _pick_tile(HW)
    T = HW // TILE

    # Free reshapes only -- no NCHW<->NHWC transpose passes over HBM.
    x3 = x_nchw.reshape(N, C_in, HW).astype(jnp.float32)
    w = conv_w.reshape(C_out, C_in).astype(jnp.float32)

    # ---------------- Pass 1: per-channel batch statistics of z = W @ x -------
    stats_cost = pl.CostEstimate(
        flops=2 * M * C_in * C_out + 4 * M * C_out,
        transcendentals=0,
        bytes_accessed=4 * (M * C_in + C_in * C_out + 2 * C_out),
    )
    s, q = pl.pallas_call(
        _stats_kernel,
        out_shape=(jax.ShapeDtypeStruct((C_out, 1), jnp.float32),
                   jax.ShapeDtypeStruct((C_out, 1), jnp.float32)),
        grid_spec=pltpu.PrefetchScalarGridSpec(
            num_scalar_prefetch=0,
            grid=(N, T),
            in_specs=[
                pl.BlockSpec((1, C_in, TILE), lambda n, t: (n, 0, t)),
                pl.BlockSpec((C_out, C_in), lambda n, t: (0, 0)),
            ],
            out_specs=(
                pl.BlockSpec((C_out, 1), lambda n, t: (0, 0)),
                pl.BlockSpec((C_out, 1), lambda n, t: (0, 0)),
            ),
        ),
        compiler_params=pltpu.CompilerParams(
            dimension_semantics=("arbitrary", "arbitrary"),
            vmem_limit_bytes=VMEM_LIMIT,
        ),
        cost_estimate=stats_cost,
    )(x3, w)

    # Fold training-mode BatchNorm (biased batch stats, eps=1e-5) into scale/shift.
    inv_m = 1.0 / float(M)
    mean_z = s[:, 0] * inv_m
    var = jnp.maximum(q[:, 0] * inv_m - mean_z * mean_z, 0.0)
    scale = bn_gamma.astype(jnp.float32) * jax.lax.rsqrt(var + BN_EPS)
    # conv bias only shifts the mean, so it cancels exactly inside batch norm:
    #   shift = beta + scale * (conv_b - (mean_z + conv_b)) = beta - scale * mean_z
    w_fold = w * scale[:, None]                                       # (C_out, C_in)
    b_fold = (bn_beta.astype(jnp.float32) - scale * mean_z)[:, None]  # (C_out, 1)
    del conv_b  # mathematically cancelled by training-mode BN

    # ---------------- Pass 2: tiled, parallel matmul + FMA + ReLU -------------
    apply_cost = pl.CostEstimate(
        flops=2 * M * C_in * C_out + M * C_out,
        transcendentals=0,
        bytes_accessed=4 * (M * C_in + M * C_out + C_in * C_out + C_out),
    )
    out3 = pl.pallas_call(
        functools.partial(_apply_kernel, apply_relu=is_relu),
        out_shape=jax.ShapeDtypeStruct((N, C_out, HW), jnp.float32),
        grid_spec=pltpu.PrefetchScalarGridSpec(
            num_scalar_prefetch=0,
            grid=(N, T),
            in_specs=[
                pl.BlockSpec((1, C_in, TILE), lambda n, t: (n, 0, t)),
                pl.BlockSpec((C_out, C_in), lambda n, t: (0, 0)),
                pl.BlockSpec((C_out, 1), lambda n, t: (0, 0)),
            ],
            out_specs=pl.BlockSpec((1, C_out, TILE), lambda n, t: (n, 0, t)),
        ),
        compiler_params=pltpu.CompilerParams(
            dimension_semantics=("parallel", "parallel"),
            vmem_limit_bytes=VMEM_LIMIT,
        ),
        cost_estimate=apply_cost,
    )(x3, w_fold, b_fold)

    return out3.reshape(N, C_out, H, W)


if __name__ == "__main__":
    # s_shape = (N, s_C, H, W), t_shape = (N, t_C, H, W) with s_H == t_H.
    N, s_C, H, W = 2, 4, 16, 16
    t_C = 8

    key = jax.random.PRNGKey(0)
    kx, kw, kb = jax.random.split(key, 3)

    x = jax.random.normal(kx, (N, s_C, H, W), dtype=jnp.float32)
    conv_w = jax.random.normal(kw, (t_C, s_C, 1, 1), dtype=jnp.float32) * 0.1
    conv_b = jax.random.normal(kb, (t_C,), dtype=jnp.float32) * 0.1
    bn_gamma = jnp.ones((t_C,), dtype=jnp.float32)   # PyTorch BatchNorm2d defaults
    bn_beta = jnp.zeros((t_C,), dtype=jnp.float32)

    out = regressor_forward(x, conv_w, conv_b, bn_gamma, bn_beta)
    jax.block_until_ready(out)
    assert out.shape == (N, t_C, H, W)

    # Pure-JAX reference: 1x1 conv + training-mode BN + ReLU.
    w_mat = conv_w.reshape(t_C, s_C)
    y_ref = jnp.einsum("oc,nchw->nohw", w_mat, x,
                       precision=jax.lax.Precision.HIGHEST)
    y_ref = y_ref + conv_b[None, :, None, None]
    mean = jnp.mean(y_ref, axis=(0, 2, 3), keepdims=True)
    var = jnp.mean((y_ref - mean) ** 2, axis=(0, 2, 3), keepdims=True)
    ref = (y_ref - mean) * jax.lax.rsqrt(var + BN_EPS)
    ref = ref * bn_gamma[None, :, None, None] + bn_beta[None, :, None, None]
    ref = jnp.maximum(ref, 0.0)

    err = float(jnp.max(jnp.abs(out - ref)))
    assert err < 5e-3, f"max abs error too large: {err}"
    print("KERNEL_OK")
</pallas_src>

<mosaic_0001>
module attributes {stable_mosaic.version = 11 : i64} {
  func.func @_stats_kernel(%arg0: i32, %arg1: i32, %arg2: memref<1x4x256xf32, #tpu.memory_space<vmem>>, %arg3: memref<8x4xf32, #tpu.memory_space<vmem>>, %arg4: memref<8x1xf32, #tpu.memory_space<vmem>>, %arg5: memref<8x1xf32, #tpu.memory_space<vmem>>) attributes {dimension_semantics = [#tpu.dimension_semantics<arbitrary>, #tpu.dimension_semantics<arbitrary>], iteration_bounds = array<i64: 2, 1>, scalar_prefetch = 0 : i64, scratch_operands = 0 : i64, tpu.core_type = #tpu.core_type<tc>, window_params = [{transform_indices = @transform_0, window_bounds = array<i64: 1, 4, 256>}, {pipeline_mode = #tpu.pipeline_mode<synchronous>, transform_indices = @transform_1, window_bounds = array<i64: 8, 4>}, {pipeline_mode = #tpu.pipeline_mode<synchronous>, transform_indices = @transform_2, window_bounds = array<i64: 8, 1>}, {pipeline_mode = #tpu.pipeline_mode<synchronous>, transform_indices = @transform_3, window_bounds = array<i64: 8, 1>}]} {
    %c0_i32 = arith.constant 0 : i32
    %0 = arith.cmpi eq, %arg0, %c0_i32 : i32
    %c0_i32_0 = arith.constant 0 : i32
    %1 = arith.cmpi eq, %arg1, %c0_i32_0 : i32
    %2 = arith.andi %0, %1 : i1
    %3 = arith.extui %2 : i1 to i32
    %c0_i32_1 = arith.constant 0 : i32
    %4 = arith.cmpi ne, %3, %c0_i32_1 : i32
    scf.if %4 {
      %cst_18 = arith.constant 0.000000e+00 : f32
      %28 = vector.broadcast %cst_18 : f32 to vector<8x1xf32>
      %c0_19 = arith.constant 0 : index
      %c0_20 = arith.constant 0 : index
      %29 = vector.load %arg4[%c0_19, %c0_20] : memref<8x1xf32, #tpu.memory_space<vmem>>, vector<8x1xf32>
      tpu.vector_store %arg4[%c0_19, %c0_20], %28 {strides = array<i32>} : memref<8x1xf32, #tpu.memory_space<vmem>>, vector<8x1xf32>,
      %cst_21 = arith.constant 0.000000e+00 : f32
      %30 = vector.broadcast %cst_21 : f32 to vector<8x1xf32>
      %c0_22 = arith.constant 0 : index
      %c0_23 = arith.constant 0 : index
      %31 = vector.load %arg5[%c0_22, %c0_23] : memref<8x1xf32, #tpu.memory_space<vmem>>, vector<8x1xf32>
      tpu.vector_store %arg5[%c0_22, %c0_23], %30 {strides = array<i32>} : memref<8x1xf32, #tpu.memory_space<vmem>>, vector<8x1xf32>,
    } else {
    }
    %c0 = arith.constant 0 : index
    %c0_2 = arith.constant 0 : index
    %c0_3 = arith.constant 0 : index
    %5 = vector.load %arg2[%c0, %c0_2, %c0_3] : memref<1x4x256xf32, #tpu.memory_space<vmem>>, vector<1x4x256xf32>
    %6 = vector.shape_cast %5 : vector<1x4x256xf32> to vector<4x256xf32>
    %c0_4 = arith.constant 0 : index
    %c0_5 = arith.constant 0 : index
    %7 = vector.load %arg3[%c0_4, %c0_5] : memref<8x4xf32, #tpu.memory_space<vmem>>, vector<8x4xf32>
    %cst = arith.constant dense<0.000000e+00> : vector<8x256xf32>
    %8 = tpu.matmul %7, %6, %cst {dimension_numbers = #tpu.dot_dimension_numbers<[1], [0], [0], [1], [0, 0, 1, 1], [], []>} : vector<8x4xf32>, vector<4x256xf32>, vector<8x256xf32> -> vector<8x256xf32>
    %cst_6 = arith.constant dense<0.000000e+00> : vector<8xf32>
    %9 = vector.multi_reduction <add>, %8, %cst_6 [1] : vector<8x256xf32> to vector<8xf32>
    %10 = vector.shape_cast %9 : vector<8xf32> to vector<8x1xf32>
    %cst_7 = arith.constant 2.560000e+02 : f32
    %11 = vector.broadcast %cst_7 : f32 to vector<8x1xf32>
    %12 = arith.divf %10, %11 : vector<8x1xf32>
    %13 = vector.broadcast %12 : vector<8x1xf32> to vector<8x256xf32>
    %14 = arith.subf %8, %13 : vector<8x256xf32>
    %15 = arith.mulf %14, %14 : vector<8x256xf32>
    %cst_8 = arith.constant dense<0.000000e+00> : vector<8xf32>
    %16 = vector.multi_reduction <add>, %15, %cst_8 [1] : vector<8x256xf32> to vector<8xf32>
    %17 = vector.shape_cast %16 : vector<8xf32> to vector<8x1xf32>
    %c0_9 = arith.constant 0 : index
    %c0_10 = arith.constant 0 : index
    %18 = vector.load %arg4[%c0_9, %c0_10] : memref<8x1xf32, #tpu.memory_space<vmem>>, vector<8x1xf32>
    %19 = arith.addf %18, %10 : vector<8x1xf32>
    %c0_11 = arith.constant 0 : index
    %c0_12 = arith.constant 0 : index
    %20 = vector.load %arg4[%c0_11, %c0_12] : memref<8x1xf32, #tpu.memory_space<vmem>>, vector<8x1xf32>
    tpu.vector_store %arg4[%c0_11, %c0_12], %19 {strides = array<i32>} : memref<8x1xf32, #tpu.memory_space<vmem>>, vector<8x1xf32>,
    %c0_13 = arith.constant 0 : index
    %c0_14 = arith.constant 0 : index
    %21 = vector.load %arg5[%c0_13, %c0_14] : memref<8x1xf32, #tpu.memory_space<vmem>>, vector<8x1xf32>
    %cst_15 = arith.constant 2.560000e+02 : f32
    %22 = vector.broadcast %cst_15 : f32 to vector<8x1xf32>
    %23 = arith.mulf %22, %12 : vector<8x1xf32>
    %24 = arith.mulf %23, %12 : vector<8x1xf32>
    %25 = arith.addf %17, %24 : vector<8x1xf32>
    %26 = arith.addf %21, %25 : vector<8x1xf32>
    %c0_16 = arith.constant 0 : index
    %c0_17 = arith.constant 0 : index
    %27 = vector.load %arg5[%c0_16, %c0_17] : memref<8x1xf32, #tpu.memory_space<vmem>>, vector<8x1xf32>
    tpu.vector_store %arg5[%c0_16, %c0_17], %26 {strides = array<i32>} : memref<8x1xf32, #tpu.memory_space<vmem>>, vector<8x1xf32>,
    return
  }
  func.func @transform_0(%arg0: i32, %arg1: i32) -> (i32, i32, i32) {
    %c0_i32 = arith.constant 0 : i32
    %c0_i32_0 = arith.constant 0 : i32
    return %arg0, %c0_i32, %arg1 : i32, i32, i32
  }
  func.func @transform_1(%arg0: i32, %arg1: i32) -> (i32, i32) {
    %c0_i32 = arith.constant 0 : i32
    %c0_i32_0 = arith.constant 0 : i32
    %c0_i32_1 = arith.constant 0 : i32
    return %c0_i32, %c0_i32_0 : i32, i32
  }
  func.func @transform_2(%arg0: i32, %arg1: i32) -> (i32, i32) {
    %c0_i32 = arith.constant 0 : i32
    %c0_i32_0 = arith.constant 0 : i32
    %c0_i32_1 = arith.constant 0 : i32
    return %c0_i32, %c0_i32_0 : i32, i32
  }
  func.func @transform_3(%arg0: i32, %arg1: i32) -> (i32, i32) {
    %c0_i32 = arith.constant 0 : i32
    %c0_i32_0 = arith.constant 0 : i32
    %c0_i32_1 = arith.constant 0 : i32
    return %c0_i32, %c0_i32_0 : i32, i32
  }
}

</mosaic_0001>

<bundles_post_ra>
// kernel: tpu_custom_call.1
= control target key start
LH: loop header
LB: loop body
LE: loop exit
PB: predicated region body
PF: predicated region fallthrough
CT: control target
= control target key end

     0   :  { %9 = vsyncpa [#allocation3], 0  ;;  %s684_s0 = inlined_call_operand.hbm [shape: f32[2,4,256], index: 0, kind: input, shape index: {}]   ;;  %s685_s1 = inlined_call_operand.vmem [shape: f32[8,4], index: 1, kind: input, shape index: {}]   ;;  %s686_s2 = inlined_call_operand.vmem [shape: f32[8,1], index: 2, kind: output, shape index: {0}]   ;;  %s687_s3 = inlined_call_operand.vmem [shape: f32[8,1], index: 3, kind: output, shape index: {1}]  }
   0x1   :  { %11 = vsyncpa [#allocation3 + $0x1], 0  ;;  %s540_s12 = smov 0   ;;  %s542_s13 = smov 0  }
   0x2   :  { %s544_s14 = smov 0   ;;  %s546_s15 = smov 0  }
   0x3   :  { %s548_s16 = smov 0   ;;  %s550_s17 = smov 0  }
   0x4 LB: > { %s361_s18 = sadd.s32 4294967295, %s515_s17   ;;  %s29_s19 = sadd.s32 1, %s511_s16  ;;  %s515_s17 = sphi %s550_s17, %s17_s17   ;;  %s511_s16 = sphi %s548_s16, %s697_s16   ;;  %s507_s15 = sphi %s546_s15, %s696_s15   ;;  %s503_s14 = sphi %s544_s14, %s695_s14   ;;  %s499_s13 = sphi %s542_s13, %s694_s13   ;;  %s495_s12 = sphi %s540_s12, %s693_s12  }
   0x5   : > { %p31_p0 = scmp.ge.s32.totalorder %s29_s19, 2  ;;  %s38_s20 = sadd.s32 1, %s503_s14 }
   0x6   : > { %p45_p1 = scmp.ne.s32.totalorder %s503_s14, %s499_s13  ;;  %p46_p2 = scmp.eq.s32.totalorder %s515_s17, 0 }
   0x7   : > { %s699_s19 = smov (%p31_p0, %s29_s19), 0  ;;  %p51_p4 = scmp.ne.s32.totalorder %s499_s13, %s495_s12 }
   0x8   : > { %p576_p3 = por %p46_p2, %p45_p1  ;;  %s33_s22 = ssub.s32 %s511_s16, %s699_s19 }
   0x9   : > { %p52_p5 = scmp.eq.s32.totalorder %s361_s18, 0  ;;  %p36_p6 = scmp.eq.s32.totalorder %s33_s22, 0 }
   0xa   : > { %p383_p8 = scmp.lt.s32.totalorder %s515_s17, 2  ;;  %s141_s25 = sand.u32 1, %s503_s14  }
   0xb   : > { %p583_p7 = por %p52_p5, %p51_p4  ;;  %s375_s26 = sshll.u32 %s511_s16, 7 }
   0xc   : > { %s589_s24 = scalar_select %p36_p6, %s503_s14, %s38_s20  }
   0xd   : > { %s364_s27 = sshll.u32 %s141_s25, 3  ;;  %s596_s30 = scalar_lea.hbm %s684_s0, %s375_s26 }
   0xe   : > { %s145_s4 = scalar_lea.vmem [#allocation2], %s364_s27  ;;  %p600_p9 = pnand %p383_p8, %p576_p3 }
   0xf   : > { %s155_s5 = sshll.u32 %s145_s4, 4  ;;  %s142_s7 = scalar_lea.sflag [#allocation3], %s141_s25  ;;  %s604_s5 = int_to_ptr.vmem [resolvable:$true] %s155_s5 }
  0x10   : > { %s435_s8 = scalar_lea.hbm %s596_s30, 128  ;;  %p437_p13 = pneg %p600_p9 }
  0x11   : > { %p436_p12 = scmp.ne.s32.totalorder %s596_s30, %s435_s8  ;;  %s440_s11 = scalar_lea.hbm %s684_s0, 256 }
  0x12   : > { %p441_p2 = scmp.lt.u32.totalorder %s596_s30, %s684_s0  ;;  %p442_p3 = scmp.lt.u32.totalorder %s440_s11, %s435_s8 }
  0x13   : > { %p438_p0 = pnand %p437_p13, %p436_p12  ;;  %p444_p5 = scmp.lt.u32.totalorder %s435_s8, %s596_s30 }
  0x14   : > { %p443_p4 = por %p442_p3, %p441_p2 }
  0x15   : > { %p439_p1 = pneg %p438_p0 }
  0x16   : > { %p445_p6 = por %p444_p5, %p443_p4 }
  0x18   : > { %p446_p8 = pnand %p445_p6, %p439_p1 }
  0x1a   : > { %449 = shalt.err (!%p446_p8)
}
  0x1b   : > { %s450_s20 = scalar_lea.vmem %s604_s5, 128  ;;  %s517_s21 = smov [#allocation2]  }
  0x1c   : > { %p451_p12 = scmp.ne.s32.totalorder %s604_s5, %s450_s20  ;;  %s455_s22 = sshll.u32 %s517_s21, 4  ;;  %s456_s22 = int_to_ptr.vmem [resolvable:$false] %s455_s22 }
  0x1d   : > { %s457_s25 = scalar_lea.vmem %s456_s22, 256  ;;  %p458_p11 = scmp.lt.s32.totalorder %s604_s5, %s456_s22 }
  0x1e   : > { %p453_p0 = pnand %p451_p12, %p437_p13  ;;  %p459_p2 = scmp.lt.s32.totalorder %s457_s25, %s450_s20 }
  0x20   : > { %p454_p10 = pneg %p453_p0  ;;  %p460_p3 = por %p459_p2, %p458_p11 }
  0x22   : > { %p461_p4 = pnand %p460_p3, %p454_p10 }
  0x24   : > { %464 = shalt.err (!%p461_p4)
}
  0x25   : > { %382 = dma.hbm_to_vmem [thread:$0]  (!%p600_p9), %s596_s30, 128, %s604_s5, %s142_s7  }
  0x26   : > { %p691_p1 = scmp.lt.s32.totalorder %s515_s17, 3  ;;  %p692_p5 = scmp.ge.s32.totalorder %s515_s17, 1 }
  0x28   : > { %p161_p13 = pnand %p692_p5, %p691_p1 }
  0x29   : > { %s166_s26 = sand.u32 (!%p161_p13), 1, %s499_s13  }
  0x2a   : > { %164 = sbr.rel (%p161_p13) target bundleno = 576 (0x240), region = 28  ;;  %s368_s27 = sshll.u32 (!%p161_p13), %s166_s26, 3 }
  0x2b   : > { %s167_s28 = scalar_lea.sflag (!%p161_p13), [#allocation3], %s166_s26  ;;  %s170_s29 = scalar_lea.vmem (!%p161_p13), [#allocation2], %s368_s27 }
  0x31   : > { %490 = dma.done.wait (%p583_p7), %s167_s28, 128  }
  0x32   : > { %492 = vsyncadd (%p583_p7), %s167_s28, 4294967168  ;;  %p189_p10 = scmp.eq.s32.totalorder %s507_s15, 0 }
  0x33   : > { %vm195_vm0 = vcmask (%p189_p10), 7168   ;;  %v518_v0 = vmov (%p189_p10), 0.0  }
  0x34   : > { %194 = sbr.rel (!%p189_p10) target bundleno = 59 (0x3b), region = 36  ;;  %196 = vst.msk [vmem:[%s686_s2] sm:$0xff] (%p189_p10), %vm195_vm0, %v518_v0  ;;  %197 = vst.msk [vmem:[%s687_s3] sm:$0xff] (%p189_p10), %vm195_vm0, %v518_v0 }
  0x3b PF: > { %v198_v1 = vld [vmem:[%s170_s29] sm:$0xff]  ;;  %vm206_vm1 = vcmask 1043456   ;;  %v519_v3 = vmov 0.0   ;;  %vm202_vm2 = vcmask 31744   ;;  %vm296_vm3 = vcmask 7168  }
  0x3c   : > { %v201_v2 = vcombine.high %v198_v1, %v198_v1  ;;  %275 = vmatprep.mubr.f32.mxu0 %v519_v3  ;;  %v199_v4 = vld [vmem:[%s685_s1] sm:$0xff] }
  0x3d   : > { %v294_v8 = vld [vmem:[%s686_s2] sm:$0xff] }
  0x3e   : > { %370 = vmatprep.subr.msk.mxu0 %vm206_vm1, %v201_v2  ;;  %v298_v19 = vld [vmem:[%s687_s3] sm:$0xff] }
  0x3f   : > { %371 = vmatpush1.msk.msra.mxu0 %vm206_vm1, %v198_v1 }
  0x40   : > { %372 = vmatmul.mubr.msk.f32.vlgmr.msra.gmra.mrb[0].mxu0 %vm202_vm2, %v199_v4 }
 0x113   : > { %v277_v5 = vpop.f32.mrb[0].mxu0 }
 0x114   : > { %v279_v6 = vpop.f32.mrb[1].mxu0 }
 0x115   : > { %v282_v7 = vadd.f32 %v279_v6, %v277_v5 }
 0x117   : > { %283 = vadd.xlane.f32.xlu0 %v282_v7 }
 0x1a4   : > { %v284_v9 = vpop.xlane.xlu0 %283 }
 0x1a5   : > { %v286_v10 = vmul.f32 0.00390625, %v284_v9  ;;  %v295_v11 = vadd.f32 %v294_v8, %v284_v9 }
 0x1a7   : > { %297 = vst.msk [vmem:[%s686_s2] sm:$0xff] %vm296_vm3, %v295_v11  ;;  %v287_v12 = vsub.f32 %v277_v5, %v286_v10  ;;  %v288_v13 = vsub.f32 %v279_v6, %v286_v10  ;;  %v299_v17 = vmul.f32 256.0, %v286_v10 }
 0x1a9   : > { %v289_v14 = vmul.f32 %v287_v12, %v287_v12  ;;  %v290_v15 = vmul.f32 %v288_v13, %v288_v13  ;;  %v300_v18 = vmul.f32 %v299_v17, %v286_v10 }
 0x1ab   : > { %v291_v16 = vadd.f32 %v290_v15, %v289_v14 }
 0x1ad   : > { %292 = vadd.xlane.f32.xlu0 %v291_v16 }
 0x23a   : > { %v293_v20 = vpop.xlane.xlu0 %292 }
 0x23b   : > { %v301_v21 = vadd.f32 %v300_v18, %v293_v20 }
 0x23d   : > { %v302_v22 = vadd.f32 %v301_v21, %v298_v19 }
 0x23f   : > { %303 = vst.msk [vmem:[%s687_s3] sm:$0xff] %vm296_vm3, %v302_v22 }
 0x240 PF: > { %s17_s17 = sadd.s32 1, %s515_s17   ;;  %s693_s12 = smov %s499_s13 }
 0x241   : > { %p14_p7 = scmp.ge.s32.totalorder %s17_s17, 4   ;;  %s694_s13 = smov %s503_s14 }
 0x242   : > { %s695_s14 = smov %s589_s24  ;;  %s696_s15 = smov %s511_s16 }
 0x243   : > { %s697_s16 = smov %s699_s19  ;;  %16 = sbr.rel (!%p14_p7) target bundleno = 4 (0x4), region = 76 }
 0x24a   :  { %321 = vsyncpa [#allocation3], 1 }
 0x24b   :  { %323 = vsyncpa [#allocation3 + $0x1], 1 }

</bundles_post_ra>
